<compile_context>
chip_gen: v7x
topology: tpu7x:2x2x1
jax: 0.10.0
libtpu: 0.0.40
codegen_flags: <defaults>
</compile_context>

<pallas_src>
import functools

import jax
import jax.numpy as jnp
from jax import lax
from jax.experimental import pallas as pl
from jax.experimental.pallas import tpu as pltpu


_LANE = 128


def _round_up(x, m):
    return (x + m - 1) // m * m


# ----------------------------------------------------------------------------
# Fused bottleneck kernel: one grid step == one image, everything stays in VMEM.
# ----------------------------------------------------------------------------
def _bottleneck_kernel(x_ref, w1_ref, w2_ref, w3_ref, b1_ref, b2_ref, b3_ref,
                       o_ref, pad_ref, *, H, W):
    Cp = x_ref.shape[-1]        # padded in/out channels (== residual channels)
    Wd = w1_ref.shape[-1]       # padded bottleneck width

    x = x_ref[0]                              # (H, W, Cp) bf16
    x2d = x.reshape(H * W, Cp)

    # ---- conv1 (1x1) + bn1 (scale already folded into w1) ----
    h1 = jnp.dot(x2d, w1_ref[...], preferred_element_type=jnp.float32)
    h1 = h1 + b1_ref[...]                     # (H*W, Wd) f32

    # ---- conv2 (3x3, stride 1, pad 1) + bn2: 9 accumulated MXU taps ----
    pad_ref[...] = jnp.zeros_like(pad_ref)    # re-zero border every step (megacore safe)
    pad_ref[1:H + 1, 1:W + 1, :] = h1.reshape(H, W, Wd)

    acc2 = jnp.zeros((H * W, Wd), jnp.float32)
    for t in range(9):                        # unrolled tap loop
        dh, dw = t // 3, t % 3
        tap = pad_ref[dh:dh + H, dw:dw + W, :].reshape(H * W, Wd)
        acc2 = acc2 + jnp.dot(tap.astype(jnp.bfloat16), w2_ref[t],
                              preferred_element_type=jnp.float32)
    h2 = acc2 + b2_ref[...]                   # (H*W, Wd) f32

    # ---- conv3 (1x1) + bn3 + residual (QuantizedAdd) ----
    h3 = jnp.dot(h2.astype(jnp.bfloat16), w3_ref[...],
                 preferred_element_type=jnp.float32)
    out = h3 + b3_ref[...] + x2d.astype(jnp.float32)
    o_ref[0] = out.reshape(H, W, Cp).astype(o_ref.dtype)


# ----------------------------------------------------------------------------
# Wrapper: weight packing (BN fold + channel pad + bf16) and the pallas_call.
# ----------------------------------------------------------------------------
def _pack_params(params, cp, wdp):
    w1 = params["w1"]            # (width, Cin, 1, 1)
    w2 = params["w2"]            # (width, width, 3, 3)
    w3 = params["w3"]            # (Cout, width, 1, 1)
    width, cin = w1.shape[0], w1.shape[1]
    cout = w3.shape[0]

    # Fold per-channel bn scales into the conv weights.
    w1p = jnp.transpose(w1[:, :, 0, 0], (1, 0)) * params["bn1_scale"][None, :]
    w2p = jnp.transpose(w2, (2, 3, 1, 0)).reshape(9, width, width)     # (t, Cin, Cout)
    w2p = w2p * params["bn2_scale"][None, None, :]
    w3p = jnp.transpose(w3[:, :, 0, 0], (1, 0)) * params["bn3_scale"][None, :]

    # Pad channels to lane multiples (128) and cast to bf16 MXU inputs.
    w1p = jnp.pad(w1p, ((0, cp - cin), (0, wdp - width))).astype(jnp.bfloat16)
    w2p = jnp.pad(w2p, ((0, 0), (0, wdp - width), (0, wdp - width))).astype(jnp.bfloat16)
    w3p = jnp.pad(w3p, ((0, wdp - width), (0, cp - cout))).astype(jnp.bfloat16)

    b1 = jnp.pad(params["bn1_bias"], (0, wdp - width)).reshape(1, wdp).astype(jnp.float32)
    b2 = jnp.pad(params["bn2_bias"], (0, wdp - width)).reshape(1, wdp).astype(jnp.float32)
    b3 = jnp.pad(params["bn3_bias"], (0, cp - cout)).reshape(1, cp).astype(jnp.float32)
    return w1p, w2p, w3p, b1, b2, b3


def quantized_bottleneck_forward_nhwc(x_nhwc, params):
    """x_nhwc: (N, H, W, Cin) float.  Returns (N, H, W, Cout) float32."""
    n, h, w, cin = x_nhwc.shape
    width = params["w1"].shape[0]
    cout = params["w3"].shape[0]
    assert cin == cout, "downsample=None path requires inplane == planes*expansion"

    cp = _round_up(max(cin, cout), _LANE)
    wdp = _round_up(width, _LANE)

    x_p = jnp.pad(x_nhwc.astype(jnp.float32),
                  ((0, 0), (0, 0), (0, 0), (0, cp - cin))).astype(jnp.bfloat16)
    w1p, w2p, w3p, b1, b2, b3 = _pack_params(params, cp, wdp)

    # Cost estimate for XLA scheduling around the custom call.
    flops = 2 * n * h * w * (cp * wdp + 9 * wdp * wdp + wdp * cp)
    bytes_accessed = (x_p.size * 2 + n * h * w * cp * 4 +
                      (w1p.size + w2p.size + w3p.size) * 2 +
                      (b1.size + b2.size + b3.size) * 4)

    # Explicit VMEM budget: double-buffered I/O blocks + resident weights +
    # padded scratch + in-kernel temporaries.
    blk_bytes = h * w * cp * (2 + 4) * 2
    wgt_bytes = 2 * ((w1p.size + w2p.size + w3p.size) * 2 +
                     (b1.size + b2.size + b3.size) * 4)
    scr_bytes = (h + 2) * (w + 2) * wdp * 4
    tmp_bytes = 6 * h * w * max(wdp, cp) * 4
    vmem_limit = int(min(
        56 * 2 ** 20,
        max(24 * 2 ** 20, 2 * (blk_bytes + wgt_bytes + scr_bytes + tmp_bytes))))

    kernel = functools.partial(_bottleneck_kernel, H=h, W=w)
    out_p = pl.pallas_call(
        kernel,
        out_shape=jax.ShapeDtypeStruct((n, h, w, cp), jnp.float32),
        grid=(n,),
        in_specs=[
            pl.BlockSpec((1, h, w, cp), lambda i: (i, 0, 0, 0)),   # x (per image)
            pl.BlockSpec((cp, wdp), lambda i: (0, 0)),             # w1 (resident)
            pl.BlockSpec((9, wdp, wdp), lambda i: (0, 0, 0)),      # w2 (resident)
            pl.BlockSpec((wdp, cp), lambda i: (0, 0)),             # w3 (resident)
            pl.BlockSpec((1, wdp), lambda i: (0, 0)),              # bn1 bias
            pl.BlockSpec((1, wdp), lambda i: (0, 0)),              # bn2 bias
            pl.BlockSpec((1, cp), lambda i: (0, 0)),               # bn3 bias
        ],
        out_specs=pl.BlockSpec((1, h, w, cp), lambda i: (i, 0, 0, 0)),
        scratch_shapes=[pltpu.VMEM((h + 2, w + 2, wdp), jnp.float32)],
        compiler_params=pltpu.CompilerParams(
            dimension_semantics=("parallel",),
            vmem_limit_bytes=vmem_limit,
        ),
        cost_estimate=pl.CostEstimate(
            flops=flops, transcendentals=0, bytes_accessed=bytes_accessed),
    )(x_p, w1p, w2p, w3p, b1, b2, b3)

    return out_p[..., :cout]
    # TODO(synk): for very large spatial extents, tile rows within an image
    #             (halo'd spatial blocks) instead of whole-image grid steps.


@jax.jit
def quantized_bottleneck_forward(x_nchw, params):
    # PyTorch boundary is NCHW; transpose once here.  Use the NHWC entry point
    # directly when the surrounding model is already channels-last.
    x_nhwc = jnp.transpose(x_nchw, (0, 2, 3, 1))
    out_nhwc = quantized_bottleneck_forward_nhwc(x_nhwc, params)
    return jnp.transpose(out_nhwc, (0, 3, 1, 2))


# ----------------------------------------------------------------------------
# Pure-JAX f32 reference (for a bf16-tolerant correctness check).
# ----------------------------------------------------------------------------
def _reference_forward(x_nchw, params):
    x = jnp.transpose(x_nchw, (0, 2, 3, 1)).astype(jnp.float32)

    def conv(h, w_oihw, padding):
        w_hwio = jnp.transpose(w_oihw, (2, 3, 1, 0))
        return lax.conv_general_dilated(
            h, w_hwio, window_strides=(1, 1), padding=padding,
            dimension_numbers=("NHWC", "HWIO", "NHWC"))

    def bn(h, scale, bias):
        return h * scale[None, None, None, :] + bias[None, None, None, :]

    out = bn(conv(x, params["w1"], "VALID"), params["bn1_scale"], params["bn1_bias"])
    out = bn(conv(out, params["w2"], "SAME"), params["bn2_scale"], params["bn2_bias"])
    out = bn(conv(out, params["w3"], "VALID"), params["bn3_scale"], params["bn3_bias"])
    out = out + x
    return jnp.transpose(out, (0, 3, 1, 2))


def init_params(key, inplane, planes, expansion=4, base_width=64, groups=1):
    width = int(planes * (base_width / 64.0)) * groups
    out_c = planes * expansion
    ks = jax.random.split(key, 9)

    def nrm(k, shape, scale=0.1):
        return scale * jax.random.normal(k, shape, jnp.float32)

    return {
        "w1": nrm(ks[0], (width, inplane, 1, 1)),
        "w2": nrm(ks[1], (width, width, 3, 3)),
        "w3": nrm(ks[2], (out_c, width, 1, 1)),
        "bn1_scale": 1.0 + nrm(ks[3], (width,)),
        "bn1_bias": nrm(ks[4], (width,)),
        "bn2_scale": 1.0 + nrm(ks[5], (width,)),
        "bn2_bias": nrm(ks[6], (width,)),
        "bn3_scale": 1.0 + nrm(ks[7], (out_c,)),
        "bn3_bias": nrm(ks[8], (out_c,)),
    }


if __name__ == "__main__":
    key = jax.random.PRNGKey(0)
    kx, kp = jax.random.split(key)

    # Residual add with downsample=None requires inplane == planes * expansion.
    N, planes, expansion = 2, 8, 4
    inplane = planes * expansion  # 32
    H = W = 8

    x = jax.random.normal(kx, (N, inplane, H, W), jnp.float32)  # NCHW, like PyTorch
    params = init_params(kp, inplane, planes, expansion)

    out = quantized_bottleneck_forward(x, params)
    out = jax.block_until_ready(out)

    assert out.shape == (N, planes * expansion, H, W), out.shape
    assert out.dtype == jnp.float32

    # bf16-tolerant numerical check against a pure-JAX f32 reference.
    ref = _reference_forward(x, params)
    err = float(jnp.max(jnp.abs(out - ref)))
    mag = float(jnp.max(jnp.abs(ref))) + 1e-6
    assert err <= 0.05 * mag + 1e-2, ("numerical mismatch", err, mag)

    print("KERNEL_OK")
</pallas_src>

<mosaic_0001>
module attributes {stable_mosaic.version = 11 : i64} {
  func.func @_bottleneck_kernel(%arg0: i32, %arg1: memref<1x8x8x128xbf16, #tpu.memory_space<vmem>>, %arg2: memref<128x128xbf16, #tpu.memory_space<vmem>>, %arg3: memref<9x128x128xbf16, #tpu.memory_space<vmem>>, %arg4: memref<128x128xbf16, #tpu.memory_space<vmem>>, %arg5: memref<1x128xf32, #tpu.memory_space<vmem>>, %arg6: memref<1x128xf32, #tpu.memory_space<vmem>>, %arg7: memref<1x128xf32, #tpu.memory_space<vmem>>, %arg8: memref<1x8x8x128xf32, #tpu.memory_space<vmem>>, %arg9: memref<10x10x128xf32, #tpu.memory_space<vmem>>) attributes {dimension_semantics = [#tpu.dimension_semantics<parallel>], iteration_bounds = array<i64: 2>, scalar_prefetch = 0 : i64, scratch_operands = 1 : i64, tpu.core_type = #tpu.core_type<tc>, window_params = [{transform_indices = @transform_0, window_bounds = array<i64: 1, 8, 8, 128>}, {pipeline_mode = #tpu.pipeline_mode<synchronous>, transform_indices = @transform_1, window_bounds = array<i64: 128, 128>}, {pipeline_mode = #tpu.pipeline_mode<synchronous>, transform_indices = @transform_2, window_bounds = array<i64: 9, 128, 128>}, {pipeline_mode = #tpu.pipeline_mode<synchronous>, transform_indices = @transform_3, window_bounds = array<i64: 128, 128>}, {pipeline_mode = #tpu.pipeline_mode<synchronous>, transform_indices = @transform_4, window_bounds = array<i64: 1, 128>}, {pipeline_mode = #tpu.pipeline_mode<synchronous>, transform_indices = @transform_5, window_bounds = array<i64: 1, 128>}, {pipeline_mode = #tpu.pipeline_mode<synchronous>, transform_indices = @transform_6, window_bounds = array<i64: 1, 128>}, {transform_indices = @transform_7, window_bounds = array<i64: 1, 8, 8, 128>}]} {
    %c0 = arith.constant 0 : index
    %c0_0 = arith.constant 0 : index
    %c0_1 = arith.constant 0 : index
    %c0_2 = arith.constant 0 : index
    %0 = vector.load %arg1[%c0, %c0_0, %c0_1, %c0_2] : memref<1x8x8x128xbf16, #tpu.memory_space<vmem>>, vector<1x8x8x128xbf16>
    %1 = vector.shape_cast %0 : vector<1x8x8x128xbf16> to vector<8x8x128xbf16>
    %2 = vector.shape_cast %1 : vector<8x8x128xbf16> to vector<64x128xbf16>
    %c0_3 = arith.constant 0 : index
    %c0_4 = arith.constant 0 : index
    %3 = vector.load %arg2[%c0_3, %c0_4] : memref<128x128xbf16, #tpu.memory_space<vmem>>, vector<128x128xbf16>
    %cst = arith.constant dense<0.000000e+00> : vector<64x128xf32>
    %4 = tpu.matmul %2, %3, %cst {dimension_numbers = #tpu.dot_dimension_numbers<[1], [0], [0], [1], [0, 0, 1, 1], [], []>} : vector<64x128xbf16>, vector<128x128xbf16>, vector<64x128xf32> -> vector<64x128xf32>
    %c0_5 = arith.constant 0 : index
    %c0_6 = arith.constant 0 : index
    %5 = vector.load %arg5[%c0_5, %c0_6] : memref<1x128xf32, #tpu.memory_space<vmem>>, vector<1x128xf32>
    %6 = vector.broadcast %5 : vector<1x128xf32> to vector<64x128xf32>
    %7 = arith.addf %4, %6 : vector<64x128xf32>
    %cst_7 = arith.constant 0.000000e+00 : f32
    %8 = vector.broadcast %cst_7 : f32 to vector<10x10x128xf32>
    %c0_8 = arith.constant 0 : index
    %c0_9 = arith.constant 0 : index
    %c0_10 = arith.constant 0 : index
    %9 = vector.load %arg9[%c0_8, %c0_9, %c0_10] : memref<10x10x128xf32, #tpu.memory_space<vmem>>, vector<10x10x128xf32>
    tpu.vector_store %arg9[%c0_8, %c0_9, %c0_10], %8 {strides = array<i32>} : memref<10x10x128xf32, #tpu.memory_space<vmem>>, vector<10x10x128xf32>,
    %10 = vector.shape_cast %7 : vector<64x128xf32> to vector<8x8x128xf32>
    %c1 = arith.constant 1 : index
    %c1_11 = arith.constant 1 : index
    %c0_12 = arith.constant 0 : index
    %11 = vector.load %arg9[%c1, %c1_11, %c0_12] : memref<10x10x128xf32, #tpu.memory_space<vmem>>, vector<8x8x128xf32>
    tpu.vector_store %arg9[%c1, %c1_11, %c0_12], %10 {strides = array<i32>} : memref<10x10x128xf32, #tpu.memory_space<vmem>>, vector<8x8x128xf32>,
    %cst_13 = arith.constant 0.000000e+00 : f32
    %12 = vector.broadcast %cst_13 : f32 to vector<64x128xf32>
    %c0_14 = arith.constant 0 : index
    %c0_15 = arith.constant 0 : index
    %c0_16 = arith.constant 0 : index
    %13 = vector.load %arg9[%c0_14, %c0_15, %c0_16] : memref<10x10x128xf32, #tpu.memory_space<vmem>>, vector<8x8x128xf32>
    %14 = vector.shape_cast %13 : vector<8x8x128xf32> to vector<64x128xf32>
    %15 = arith.truncf %14 : vector<64x128xf32> to vector<64x128xbf16>
    %c0_17 = arith.constant 0 : index
    %c0_18 = arith.constant 0 : index
    %c0_19 = arith.constant 0 : index
    %16 = vector.load %arg3[%c0_17, %c0_18, %c0_19] : memref<9x128x128xbf16, #tpu.memory_space<vmem>>, vector<1x128x128xbf16>
    %17 = vector.shape_cast %16 : vector<1x128x128xbf16> to vector<128x128xbf16>
    %cst_20 = arith.constant dense<0.000000e+00> : vector<64x128xf32>
    %18 = tpu.matmul %15, %17, %cst_20 {dimension_numbers = #tpu.dot_dimension_numbers<[1], [0], [0], [1], [0, 0, 1, 1], [], []>} : vector<64x128xbf16>, vector<128x128xbf16>, vector<64x128xf32> -> vector<64x128xf32>
    %19 = arith.addf %12, %18 : vector<64x128xf32>
    %c0_21 = arith.constant 0 : index
    %c1_22 = arith.constant 1 : index
    %c0_23 = arith.constant 0 : index
    %20 = vector.load %arg9[%c0_21, %c1_22, %c0_23] : memref<10x10x128xf32, #tpu.memory_space<vmem>>, vector<8x8x128xf32>
    %21 = vector.shape_cast %20 : vector<8x8x128xf32> to vector<64x128xf32>
    %22 = arith.truncf %21 : vector<64x128xf32> to vector<64x128xbf16>
    %c1_24 = arith.constant 1 : index
    %c0_25 = arith.constant 0 : index
    %c0_26 = arith.constant 0 : index
    %23 = vector.load %arg3[%c1_24, %c0_25, %c0_26] : memref<9x128x128xbf16, #tpu.memory_space<vmem>>, vector<1x128x128xbf16>
    %24 = vector.shape_cast %23 : vector<1x128x128xbf16> to vector<128x128xbf16>
    %cst_27 = arith.constant dense<0.000000e+00> : vector<64x128xf32>
    %25 = tpu.matmul %22, %24, %cst_27 {dimension_numbers = #tpu.dot_dimension_numbers<[1], [0], [0], [1], [0, 0, 1, 1], [], []>} : vector<64x128xbf16>, vector<128x128xbf16>, vector<64x128xf32> -> vector<64x128xf32>
    %26 = arith.addf %19, %25 : vector<64x128xf32>
    %c0_28 = arith.constant 0 : index
    %c2 = arith.constant 2 : index
    %c0_29 = arith.constant 0 : index
    %27 = vector.load %arg9[%c0_28, %c2, %c0_29] : memref<10x10x128xf32, #tpu.memory_space<vmem>>, vector<8x8x128xf32>
    %28 = vector.shape_cast %27 : vector<8x8x128xf32> to vector<64x128xf32>
    %29 = arith.truncf %28 : vector<64x128xf32> to vector<64x128xbf16>
    %c2_30 = arith.constant 2 : index
    %c0_31 = arith.constant 0 : index
    %c0_32 = arith.constant 0 : index
    %30 = vector.load %arg3[%c2_30, %c0_31, %c0_32] : memref<9x128x128xbf16, #tpu.memory_space<vmem>>, vector<1x128x128xbf16>
    %31 = vector.shape_cast %30 : vector<1x128x128xbf16> to vector<128x128xbf16>
    %cst_33 = arith.constant dense<0.000000e+00> : vector<64x128xf32>
    %32 = tpu.matmul %29, %31, %cst_33 {dimension_numbers = #tpu.dot_dimension_numbers<[1], [0], [0], [1], [0, 0, 1, 1], [], []>} : vector<64x128xbf16>, vector<128x128xbf16>, vector<64x128xf32> -> vector<64x128xf32>
    %33 = arith.addf %26, %32 : vector<64x128xf32>
    %c1_34 = arith.constant 1 : index
    %c0_35 = arith.constant 0 : index
    %c0_36 = arith.constant 0 : index
    %34 = vector.load %arg9[%c1_34, %c0_35, %c0_36] : memref<10x10x128xf32, #tpu.memory_space<vmem>>, vector<8x8x128xf32>
    %35 = vector.shape_cast %34 : vector<8x8x128xf32> to vector<64x128xf32>
    %36 = arith.truncf %35 : vector<64x128xf32> to vector<64x128xbf16>
    %c3 = arith.constant 3 : index
    %c0_37 = arith.constant 0 : index
    %c0_38 = arith.constant 0 : index
    %37 = vector.load %arg3[%c3, %c0_37, %c0_38] : memref<9x128x128xbf16, #tpu.memory_space<vmem>>, vector<1x128x128xbf16>
    %38 = vector.shape_cast %37 : vector<1x128x128xbf16> to vector<128x128xbf16>
    %cst_39 = arith.constant dense<0.000000e+00> : vector<64x128xf32>
    %39 = tpu.matmul %36, %38, %cst_39 {dimension_numbers = #tpu.dot_dimension_numbers<[1], [0], [0], [1], [0, 0, 1, 1], [], []>} : vector<64x128xbf16>, vector<128x128xbf16>, vector<64x128xf32> -> vector<64x128xf32>
    %40 = arith.addf %33, %39 : vector<64x128xf32>
    %c1_40 = arith.constant 1 : index
    %c1_41 = arith.constant 1 : index
    %c0_42 = arith.constant 0 : index
    %41 = vector.load %arg9[%c1_40, %c1_41, %c0_42] : memref<10x10x128xf32, #tpu.memory_space<vmem>>, vector<8x8x128xf32>
    %42 = vector.shape_cast %41 : vector<8x8x128xf32> to vector<64x128xf32>
    %43 = arith.truncf %42 : vector<64x128xf32> to vector<64x128xbf16>
    %c4 = arith.constant 4 : index
    %c0_43 = arith.constant 0 : index
    %c0_44 = arith.constant 0 : index
    %44 = vector.load %arg3[%c4, %c0_43, %c0_44] : memref<9x128x128xbf16, #tpu.memory_space<vmem>>, vector<1x128x128xbf16>
    %45 = vector.shape_cast %44 : vector<1x128x128xbf16> to vector<128x128xbf16>
    %cst_45 = arith.constant dense<0.000000e+00> : vector<64x128xf32>
    %46 = tpu.matmul %43, %45, %cst_45 {dimension_numbers = #tpu.dot_dimension_numbers<[1], [0], [0], [1], [0, 0, 1, 1], [], []>} : vector<64x128xbf16>, vector<128x128xbf16>, vector<64x128xf32> -> vector<64x128xf32>
    %47 = arith.addf %40, %46 : vector<64x128xf32>
    %c1_46 = arith.constant 1 : index
    %c2_47 = arith.constant 2 : index
    %c0_48 = arith.constant 0 : index
    %48 = vector.load %arg9[%c1_46, %c2_47, %c0_48] : memref<10x10x128xf32, #tpu.memory_space<vmem>>, vector<8x8x128xf32>
    %49 = vector.shape_cast %48 : vector<8x8x128xf32> to vector<64x128xf32>
    %50 = arith.truncf %49 : vector<64x128xf32> to vector<64x128xbf16>
    %c5 = arith.constant 5 : index
    %c0_49 = arith.constant 0 : index
    %c0_50 = arith.constant 0 : index
    %51 = vector.load %arg3[%c5, %c0_49, %c0_50] : memref<9x128x128xbf16, #tpu.memory_space<vmem>>, vector<1x128x128xbf16>
    %52 = vector.shape_cast %51 : vector<1x128x128xbf16> to vector<128x128xbf16>
    %cst_51 = arith.constant dense<0.000000e+00> : vector<64x128xf32>
    %53 = tpu.matmul %50, %52, %cst_51 {dimension_numbers = #tpu.dot_dimension_numbers<[1], [0], [0], [1], [0, 0, 1, 1], [], []>} : vector<64x128xbf16>, vector<128x128xbf16>, vector<64x128xf32> -> vector<64x128xf32>
    %54 = arith.addf %47, %53 : vector<64x128xf32>
    %c2_52 = arith.constant 2 : index
    %c0_53 = arith.constant 0 : index
    %c0_54 = arith.constant 0 : index
    %55 = vector.load %arg9[%c2_52, %c0_53, %c0_54] : memref<10x10x128xf32, #tpu.memory_space<vmem>>, vector<8x8x128xf32>
    %56 = vector.shape_cast %55 : vector<8x8x128xf32> to vector<64x128xf32>
    %57 = arith.truncf %56 : vector<64x128xf32> to vector<64x128xbf16>
    %c6 = arith.constant 6 : index
    %c0_55 = arith.constant 0 : index
    %c0_56 = arith.constant 0 : index
    %58 = vector.load %arg3[%c6, %c0_55, %c0_56] : memref<9x128x128xbf16, #tpu.memory_space<vmem>>, vector<1x128x128xbf16>
    %59 = vector.shape_cast %58 : vector<1x128x128xbf16> to vector<128x128xbf16>
    %cst_57 = arith.constant dense<0.000000e+00> : vector<64x128xf32>
    %60 = tpu.matmul %57, %59, %cst_57 {dimension_numbers = #tpu.dot_dimension_numbers<[1], [0], [0], [1], [0, 0, 1, 1], [], []>} : vector<64x128xbf16>, vector<128x128xbf16>, vector<64x128xf32> -> vector<64x128xf32>
    %61 = arith.addf %54, %60 : vector<64x128xf32>
    %c2_58 = arith.constant 2 : index
    %c1_59 = arith.constant 1 : index
    %c0_60 = arith.constant 0 : index
    %62 = vector.load %arg9[%c2_58, %c1_59, %c0_60] : memref<10x10x128xf32, #tpu.memory_space<vmem>>, vector<8x8x128xf32>
    %63 = vector.shape_cast %62 : vector<8x8x128xf32> to vector<64x128xf32>
    %64 = arith.truncf %63 : vector<64x128xf32> to vector<64x128xbf16>
    %c7 = arith.constant 7 : index
    %c0_61 = arith.constant 0 : index
    %c0_62 = arith.constant 0 : index
    %65 = vector.load %arg3[%c7, %c0_61, %c0_62] : memref<9x128x128xbf16, #tpu.memory_space<vmem>>, vector<1x128x128xbf16>
    %66 = vector.shape_cast %65 : vector<1x128x128xbf16> to vector<128x128xbf16>
    %cst_63 = arith.constant dense<0.000000e+00> : vector<64x128xf32>
    %67 = tpu.matmul %64, %66, %cst_63 {dimension_numbers = #tpu.dot_dimension_numbers<[1], [0], [0], [1], [0, 0, 1, 1], [], []>} : vector<64x128xbf16>, vector<128x128xbf16>, vector<64x128xf32> -> vector<64x128xf32>
    %68 = arith.addf %61, %67 : vector<64x128xf32>
    %c2_64 = arith.constant 2 : index
    %c2_65 = arith.constant 2 : index
    %c0_66 = arith.constant 0 : index
    %69 = vector.load %arg9[%c2_64, %c2_65, %c0_66] : memref<10x10x128xf32, #tpu.memory_space<vmem>>, vector<8x8x128xf32>
    %70 = vector.shape_cast %69 : vector<8x8x128xf32> to vector<64x128xf32>
    %71 = arith.truncf %70 : vector<64x128xf32> to vector<64x128xbf16>
    %c8 = arith.constant 8 : index
    %c0_67 = arith.constant 0 : index
    %c0_68 = arith.constant 0 : index
    %72 = vector.load %arg3[%c8, %c0_67, %c0_68] : memref<9x128x128xbf16, #tpu.memory_space<vmem>>, vector<1x128x128xbf16>
    %73 = vector.shape_cast %72 : vector<1x128x128xbf16> to vector<128x128xbf16>
    %cst_69 = arith.constant dense<0.000000e+00> : vector<64x128xf32>
    %74 = tpu.matmul %71, %73, %cst_69 {dimension_numbers = #tpu.dot_dimension_numbers<[1], [0], [0], [1], [0, 0, 1, 1], [], []>} : vector<64x128xbf16>, vector<128x128xbf16>, vector<64x128xf32> -> vector<64x128xf32>
    %75 = arith.addf %68, %74 : vector<64x128xf32>
    %c0_70 = arith.constant 0 : index
    %c0_71 = arith.constant 0 : index
    %76 = vector.load %arg6[%c0_70, %c0_71] : memref<1x128xf32, #tpu.memory_space<vmem>>, vector<1x128xf32>
    %77 = vector.broadcast %76 : vector<1x128xf32> to vector<64x128xf32>
    %78 = arith.addf %75, %77 : vector<64x128xf32>
    %79 = arith.truncf %78 : vector<64x128xf32> to vector<64x128xbf16>
    %c0_72 = arith.constant 0 : index
    %c0_73 = arith.constant 0 : index
    %80 = vector.load %arg4[%c0_72, %c0_73] : memref<128x128xbf16, #tpu.memory_space<vmem>>, vector<128x128xbf16>
    %cst_74 = arith.constant dense<0.000000e+00> : vector<64x128xf32>
    %81 = tpu.matmul %79, %80, %cst_74 {dimension_numbers = #tpu.dot_dimension_numbers<[1], [0], [0], [1], [0, 0, 1, 1], [], []>} : vector<64x128xbf16>, vector<128x128xbf16>, vector<64x128xf32> -> vector<64x128xf32>
    %c0_75 = arith.constant 0 : index
    %c0_76 = arith.constant 0 : index
    %82 = vector.load %arg7[%c0_75, %c0_76] : memref<1x128xf32, #tpu.memory_space<vmem>>, vector<1x128xf32>
    %83 = vector.broadcast %82 : vector<1x128xf32> to vector<64x128xf32>
    %84 = arith.addf %81, %83 : vector<64x128xf32>
    %85 = arith.extf %2 : vector<64x128xbf16> to vector<64x128xf32>
    %86 = arith.addf %84, %85 : vector<64x128xf32>
    %87 = vector.shape_cast %86 : vector<64x128xf32> to vector<8x8x128xf32>
    %c0_77 = arith.constant 0 : index
    %c0_78 = arith.constant 0 : index
    %c0_79 = arith.constant 0 : index
    %c0_80 = arith.constant 0 : index
    %88 = vector.load %arg8[%c0_77, %c0_78, %c0_79, %c0_80] : memref<1x8x8x128xf32, #tpu.memory_space<vmem>>, vector<1x8x8x128xf32>
    %89 = vector.shape_cast %88 : vector<1x8x8x128xf32> to vector<8x8x128xf32>
    %90 = vector.shape_cast %87 : vector<8x8x128xf32> to vector<1x8x8x128xf32>
    tpu.vector_store %arg8[%c0_77, %c0_78, %c0_79, %c0_80], %90 {strides = array<i32>} : memref<1x8x8x128xf32, #tpu.memory_space<vmem>>, vector<1x8x8x128xf32>,
    return
  }
  func.func @transform_0(%arg0: i32) -> (i32, i32, i32, i32) {
    %c0_i32 = arith.constant 0 : i32
    %c0_i32_0 = arith.constant 0 : i32
    %c0_i32_1 = arith.constant 0 : i32
    %c0_i32_2 = arith.constant 0 : i32
    return %arg0, %c0_i32, %c0_i32_0, %c0_i32_1 : i32, i32, i32, i32
  }
  func.func @transform_1(%arg0: i32) -> (i32, i32) {
    %c0_i32 = arith.constant 0 : i32
    %c0_i32_0 = arith.constant 0 : i32
    %c0_i32_1 = arith.constant 0 : i32
    return %c0_i32, %c0_i32_0 : i32, i32
  }
  func.func @transform_2(%arg0: i32) -> (i32, i32, i32) {
    %c0_i32 = arith.constant 0 : i32
    %c0_i32_0 = arith.constant 0 : i32
    %c0_i32_1 = arith.constant 0 : i32
    %c0_i32_2 = arith.constant 0 : i32
    return %c0_i32, %c0_i32_0, %c0_i32_1 : i32, i32, i32
  }
  func.func @transform_3(%arg0: i32) -> (i32, i32) {
    %c0_i32 = arith.constant 0 : i32
    %c0_i32_0 = arith.constant 0 : i32
    %c0_i32_1 = arith.constant 0 : i32
    return %c0_i32, %c0_i32_0 : i32, i32
  }
  func.func @transform_4(%arg0: i32) -> (i32, i32) {
    %c0_i32 = arith.constant 0 : i32
    %c0_i32_0 = arith.constant 0 : i32
    %c0_i32_1 = arith.constant 0 : i32
    return %c0_i32, %c0_i32_0 : i32, i32
  }
  func.func @transform_5(%arg0: i32) -> (i32, i32) {
    %c0_i32 = arith.constant 0 : i32
    %c0_i32_0 = arith.constant 0 : i32
    %c0_i32_1 = arith.constant 0 : i32
    return %c0_i32, %c0_i32_0 : i32, i32
  }
  func.func @transform_6(%arg0: i32) -> (i32, i32) {
    %c0_i32 = arith.constant 0 : i32
    %c0_i32_0 = arith.constant 0 : i32
    %c0_i32_1 = arith.constant 0 : i32
    return %c0_i32, %c0_i32_0 : i32, i32
  }
  func.func @transform_7(%arg0: i32) -> (i32, i32, i32, i32) {
    %c0_i32 = arith.constant 0 : i32
    %c0_i32_0 = arith.constant 0 : i32
    %c0_i32_1 = arith.constant 0 : i32
    %c0_i32_2 = arith.constant 0 : i32
    return %arg0, %c0_i32, %c0_i32_0, %c0_i32_1 : i32, i32, i32, i32
  }
}

</mosaic_0001>

<bundles_post_ra>
// kernel: quantized_bottleneck_forward.1
= control target key start
LH: loop header
LB: loop body
LE: loop exit
PB: predicated region body
PF: predicated region fallthrough
CT: control target
= control target key end

     0   :  { %s2899_s24 = smov 0   ;;  %s3332_s0 = inlined_call_operand.vmem [shape: bf16[2,8,8,128], index: 0, kind: input, shape index: {}]   ;;  %s3333_s1 = inlined_call_operand.vmem [shape: bf16[128,128], index: 1, kind: input, shape index: {}]   ;;  %s3334_s2 = inlined_call_operand.vmem [shape: bf16[9,128,128], index: 2, kind: input, shape index: {}]   ;;  %s3335_s3 = inlined_call_operand.vmem [shape: bf16[128,128], index: 3, kind: input, shape index: {}]   ;;  %s3336_s4 = inlined_call_operand.vmem [shape: f32[1,128], index: 4, kind: input, shape index: {}]   ;;  %s3337_s5 = inlined_call_operand.vmem [shape: f32[1,128], index: 5, kind: input, shape index: {}]   ;;  %s3338_s6 = inlined_call_operand.vmem [shape: f32[1,128], index: 6, kind: input, shape index: {}]   ;;  %s3339_s7 = inlined_call_operand.vmem [shape: f32[2,8,8,128], index: 7, kind: output, shape index: {}]  }
   0x1 LB: > { %s2045_s25 = sadd.s32 4294967295, %s2856_s24   ;;  %p2049_p0 = scmp.ge.s32.totalorder %s2856_s24, 1  ;;  %s2856_s24 = sphi %s2899_s24, %s17_s24  }
   0x2   : > { %p237_p1 = scmp.lt.s32.totalorder %s2856_s24, 3 }
   0x4   : > { %p238_p2 = pnand %p2049_p0, %p237_p1 }
   0x5   : > { %v2750_v0 = vld [vmem:[%s3333_s1] sm:$0xff] (!%p238_p2)   ;;  %p269_p3 = scmp.lt.s32.totalorder (!%p238_p2), %s2045_s25, 1  ;;  %v2751_v1 = vld [vmem:[%s3333_s1 + $0x8] sm:$0xff] (!%p238_p2)   ;;  %v2752_v2 = vld [vmem:[%s3333_s1 + $0x10] sm:$0xff] (!%p238_p2)   ;;  %v2858_v22 = vmov (!%p238_p2), 0.0  }
   0x6   : > { %241 = sbr.rel (%p238_p2) target bundleno = 876 (0x36c), region = 48  ;;  %2413 = vmatprep.subr.bf16.mxu0 (!%p238_p2), %v2750_v0  ;;  %v2753_v3 = vld [vmem:[%s3333_s1 + $0x18] sm:$0xff] (!%p238_p2)   ;;  %v2763_v5 = vld [vmem:[%s3334_s2 + $0xc0] sm:$0xff] (!%p238_p2)   ;;  %v2765_v7 = vld [vmem:[%s3334_s2 + $0xc8] sm:$0xff] (!%p238_p2)   ;;  %454 = vst [vmem:[#allocation2 + $0x30] sm:$0xff] (!%p238_p2), %v2858_v22 }
   0x7   : > { %2414 = vmatpush3.bf16.msra.mxu0 (!%p238_p2), %v2750_v0  ;;  %v2754_v6 = vld [vmem:[%s3333_s1 + $0x20] sm:$0xff] (!%p238_p2)   ;;  %2509 = vmatprep.subr.bf16.mxu1 (!%p238_p2), %v2763_v5  ;;  %v2767_v8 = vld [vmem:[%s3334_s2 + $0xd0] sm:$0xff] (!%p238_p2)   ;;  %v2755_v9 = vld [vmem:[%s3333_s1 + $0x28] sm:$0xff] (!%p238_p2)   ;;  %455 = vst [vmem:[#allocation2 + $0x38] sm:$0x3] (!%p238_p2), %v2858_v22 }
   0x8   : > { %2415 = vmatprep.subr.bf16.mxu0 (!%p238_p2), %v2751_v1  ;;  %2510 = vmatpush3.bf16.msra.mxu1 (!%p238_p2), %v2763_v5  ;;  %v2756_v10 = vld [vmem:[%s3333_s1 + $0x30] sm:$0xff] (!%p238_p2)   ;;  %v2769_v11 = vld [vmem:[%s3334_s2 + $0xd8] sm:$0xff] (!%p238_p2)   ;;  %v2762_v15 = vld [vmem:[%s3334_s2 + $0x40] sm:$0xff] (!%p238_p2)   ;;  %448 = vst [vmem:[#allocation2] sm:$0xff] (!%p238_p2), %v2858_v22 }
   0x9   : > { %2511 = vmatprep.subr.bf16.mxu1 (!%p238_p2), %v2765_v7  ;;  %v2757_v12 = vld [vmem:[%s3333_s1 + $0x38] sm:$0xff] (!%p238_p2)   ;;  %v2764_v16 = vld [vmem:[%s3334_s2 + $0x48] sm:$0xff] (!%p238_p2)   ;;  %v2766_v18 = vld [vmem:[%s3334_s2 + $0x50] sm:$0xff] (!%p238_p2)   ;;  %449 = vst [vmem:[#allocation2 + $0x8] sm:$0x3] (!%p238_p2), %v2858_v22 }
   0xa   : > { %v2768_v19 = vld [vmem:[%s3334_s2 + $0x58] sm:$0xff] (!%p238_p2)   ;;  %v2770_v20 = vld [vmem:[%s3334_s2 + $0x60] sm:$0xff] (!%p238_p2)   ;;  %v2772_v21 = vld [vmem:[%s3334_s2 + $0x68] sm:$0xff] (!%p238_p2)   ;;  %450 = vst [vmem:[#allocation2 + $0x10] sm:$0xff] (!%p238_p2), %v2858_v22 }
   0xb   : > { %2416 = vmatpush3.bf16.msra.mxu0 (!%p238_p2), %v2751_v1  ;;  %451 = vst [vmem:[#allocation2 + $0x18] sm:$0x3] (!%p238_p2), %v2858_v22  ;;  %452 = vst [vmem:[#allocation2 + $0x20] sm:$0xff] (!%p238_p2), %v2858_v22  ;;  %v2774_v23 = vld [vmem:[%s3334_s2 + $0x70] sm:$0xff] (!%p238_p2)   ;;  %v2771_v24 = vld [vmem:[%s3334_s2 + $0xe0] sm:$0xff] (!%p238_p2)  }
   0xc   : > { %2417 = vmatprep.subr.bf16.mxu0 (!%p238_p2), %v2752_v2  ;;  %2512 = vmatpush3.bf16.msra.mxu1 (!%p238_p2), %v2765_v7  ;;  %453 = vst [vmem:[#allocation2 + $0x28] sm:$0x3] (!%p238_p2), %v2858_v22  ;;  %456 = vst [vmem:[#allocation2 + $0x40] sm:$0xff] (!%p238_p2), %v2858_v22  ;;  %v2776_v25 = vld [vmem:[%s3334_s2 + $0x78] sm:$0xff] (!%p238_p2)   ;;  %v2773_v26 = vld [vmem:[%s3334_s2 + $0xe8] sm:$0xff] (!%p238_p2)  }
   0xd   : > { %s3341_s25 = smov (!%p269_p3, %s2045_s25), 1  ;;  %2513 = vmatprep.subr.bf16.mxu1 %v2767_v8  ;;  %457 = vst [vmem:[#allocation2 + $0x48] sm:$0x3] %v2858_v22  ;;  %458 = vst [vmem:[#allocation2 + $0x50] sm:$0xff] %v2858_v22  ;;  %v2778_v27 = vld [vmem:[%s3334_s2] sm:$0xff]   ;;  %v2775_v28 = vld [vmem:[%s3334_s2 + $0xf0] sm:$0xff]  }
   0xe   : > { %s2279_s9 = sshll.u32 %s3341_s25, 5  ;;  %459 = vst [vmem:[#allocation2 + $0x58] sm:$0x3] %v2858_v22  ;;  %460 = vst [vmem:[#allocation2 + $0x60] sm:$0xff] %v2858_v22  ;;  %v2777_v29 = vld [vmem:[%s3334_s2 + $0xf8] sm:$0xff]   ;;  %v2779_v30 = vld [vmem:[%s3334_s2 + $0x100] sm:$0xff]  }
   0xf   : > { %s2922_s12 = scalar_lea.vmem %s3332_s0, %s2279_s9  ;;  %2418 = vmatpush3.bf16.msra.mxu0 %v2752_v2  ;;  %461 = vst [vmem:[#allocation2 + $0x68] sm:$0x3] %v2858_v22  ;;  %462 = vst [vmem:[#allocation2 + $0x70] sm:$0xff] %v2858_v22  ;;  %v2054_v31 = vld [vmem:[%s3336_s4] ss:$0 sm:$0xff]  ;;  %v2780_v44 = vld [vmem:[%s3334_s2 + $0x8] sm:$0xff]  }
  0x10   : > { %v280_v4 = vld [vmem:[%s2922_s12] sm:$0xff]   ;;  %2419 = vmatprep.subr.bf16.mxu0 %v2753_v3  ;;  %2514 = vmatpush3.bf16.msra.mxu1 %v2767_v8  ;;  %v282_v13 = vld [vmem:[%s2922_s12 + $0x8] sm:$0xff]   ;;  %v284_v14 = vld [vmem:[%s2922_s12 + $0x10] sm:$0xff]   ;;  %463 = vst [vmem:[#allocation2 + $0x78] sm:$0x3] %v2858_v22  ;;  %s2280_s8 = sshll.u32 %s3341_s25, 6 }
  0x11   : > { %2429 = vmatprep.mubr.bf16.mxu0 %v280_v4  ;;  %2515 = vmatprep.subr.bf16.mxu1 %v2769_v11  ;;  %v286_v17 = vld [vmem:[%s2922_s12 + $0x18] sm:$0xff]   ;;  %464 = vst [vmem:[#allocation2 + $0x80] sm:$0xff] %v2858_v22  ;;  %465 = vst [vmem:[#allocation2 + $0x88] sm:$0x3] %v2858_v22  ;;  %v505_v35 = vld [vmem:[#allocation2 + $0x1] sm:$0xff]  ;;  %s3317_s11 = scalar_lea.vmem %s3339_s7, %s2280_s8 }
  0x12   : > { %466 = vst [vmem:[#allocation2 + $0x90] sm:$0xff] %v2858_v22  ;;  %467 = vst [vmem:[#allocation2 + $0x98] sm:$0x3] %v2858_v22  ;;  %v2782_v51 = vld [vmem:[%s3334_s2 + $0x10] sm:$0xff]   ;;  %v2781_v0 = vld [vmem:[%s3334_s2 + $0x108] sm:$0xff]  }
  0x13   : > { %2420 = vmatpush3.bf16.msra.mxu0 %v2753_v3  ;;  %v2784_v1 = vld [vmem:[%s3334_s2 + $0x18] sm:$0xff]   ;;  %v2786_v5 = vld [vmem:[%s3334_s2 + $0x20] sm:$0xff]  }
  0x14   : > { %2421 = vmatprep.subr.bf16.mxu0 %v2754_v6  ;;  %2516 = vmatpush3.bf16.msra.mxu1 %v2769_v11 }
  0x15   : > { %2517 = vmatprep.subr.bf16.mxu1 %v2771_v24 }
  0x17   : > { %2422 = vmatpush3.bf16.msra.mxu0 %v2754_v6  ;;  %v2783_v6 = vld [vmem:[%s3334_s2 + $0x110] sm:$0xff]  }
  0x18   : > { %2423 = vmatprep.subr.bf16.mxu0 %v2755_v9  ;;  %2518 = vmatpush3.bf16.msra.mxu1 %v2771_v24 }
  0x19   : > { %2519 = vmatprep.subr.bf16.mxu1 %v2773_v26 }
  0x1b   : > { %2424 = vmatpush3.bf16.msra.mxu0 %v2755_v9 }
  0x1c   : > { %2425 = vmatprep.subr.bf16.mxu0 %v2756_v10  ;;  %2520 = vmatpush3.bf16.msra.mxu1 %v2773_v26  ;;  %v2795_v26 = vld [vmem:[%s3334_s2 + $0x140] sm:$0xff]  }
  0x1d   : > { %2521 = vmatprep.subr.bf16.mxu1 %v2775_v28 }
  0x1f   : > { %2426 = vmatpush3.bf16.msra.mxu0 %v2756_v10 }
  0x20   : > { %2427 = vmatprep.subr.bf16.mxu0 %v2757_v12  ;;  %2522 = vmatpush3.bf16.msra.mxu1 %v2775_v28  ;;  %v760_v28 = vld [vmem:[#allocation2 + $0x2] sm:$0xff] }
  0x21   : > { %2523 = vmatprep.subr.bf16.mxu1 %v2777_v29 }
  0x23   : > { %2428 = vmatpush3.bf16.msra.mxu0 %v2757_v12  ;;  %v2785_v12 = vld [vmem:[%s3334_s2 + $0x118] sm:$0xff]  }
  0x24   : > { %2437 = vmatprep.subr.bf16.mxu0 %v2762_v15  ;;  %2524 = vmatpush3.bf16.msra.mxu1 %v2777_v29 }
  0x25   : > { %2533 = vmatprep.subr.bf16.mxu1 %v2779_v30 }
  0x26   : > { %2430 = vmatmul.mubr.bf16.vlgmr.msra.gmra.mrb[0].mxu0 %v282_v13  ;;  %v2788_v13 = vld [vmem:[%s3334_s2 + $0x28] sm:$0xff]  }
  0x27   : > { %2433 = vmatprep.mubr.bf16.mxu0 %v284_v14  ;;  %2438 = vmatpush3.bf16.msra.mxu0 %v2762_v15  ;;  %v2790_v14 = vld [vmem:[%s3334_s2 + $0x30] sm:$0xff]   ;;  %v2787_v15 = vld [vmem:[%s3334_s2 + $0x120] sm:$0xff]  }
  0x28   : > { %2439 = vmatprep.subr.bf16.mxu0 %v2764_v16 }
  0x2b   : > { %2440 = vmatpush3.bf16.msra.mxu0 %v2764_v16  ;;  %v2792_v16 = vld [vmem:[%s3334_s2 + $0x38] sm:$0xff]  }
  0x2c   : > { %2441 = vmatprep.subr.bf16.mxu0 %v2766_v18 }
  0x2e   : > { %2434 = vmatmul.mubr.bf16.gmra.mrb[4].mxu0 %v286_v17  ;;  %v2789_v17 = vld [vmem:[%s3334_s2 + $0x128] sm:$0xff]  }
  0x2f   : > { %2442 = vmatpush3.bf16.msra.mxu0 %v2766_v18  ;;  %v2794_v18 = vld [vmem:[%s3334_s2 + $0x80] sm:$0xff]  }
  0x30   : > { %2443 = vmatprep.subr.bf16.mxu0 %v2768_v19 }
  0x33   : > { %2444 = vmatpush3.bf16.msra.mxu0 %v2768_v19  ;;  %v2791_v19 = vld [vmem:[%s3334_s2 + $0x130] sm:$0xff]  }
  0x34   : > { %2445 = vmatprep.subr.bf16.mxu0 %v2770_v20 }
  0x37   : > { %2446 = vmatpush3.bf16.msra.mxu0 %v2770_v20 }
  0x38   : > { %2447 = vmatprep.subr.bf16.mxu0 %v2772_v21 }
  0x3b   : > { %2448 = vmatpush3.bf16.msra.mxu0 %v2772_v21  ;;  %v2796_v21 = vld [vmem:[%s3334_s2 + $0x88] sm:$0xff]  }
  0x3c   : > { %2449 = vmatprep.subr.bf16.mxu0 %v2774_v23 }
  0x3f   : > { %2450 = vmatpush3.bf16.msra.mxu0 %v2774_v23  ;;  %v2793_v23 = vld [vmem:[%s3334_s2 + $0x138] sm:$0xff]  }
  0x40   : > { %2451 = vmatprep.subr.bf16.mxu0 %v2776_v25 }
  0x43   : > { %2452 = vmatpush3.bf16.msra.mxu0 %v2776_v25  ;;  %v2798_v25 = vld [vmem:[%s3334_s2 + $0x90] sm:$0xff]  }
  0x44   : > { %2461 = vmatprep.subr.bf16.mxu0 %v2778_v27 }
  0xf9   : > { %v2431_v32 = vpop.f32.mrb[0].mxu0 }
  0xfa   : > { %v3020_v33 = vadd.f32 %v2431_v32, %v2054_v31  ;;  %v417_v34 = vpop.f32.mrb[1].mxu0 }
  0xfb   : > { %v3022_v36 = vadd.f32 %v2054_v31, %v417_v34  ;;  %v2432_v37 = vpop.f32.mrb[2].mxu0  ;;  %v2802_v34 = vld [vmem:[%s3334_s2 + $0xa0] sm:$0xff]  }
  0xfc   : > { %471 = vst [vmem:[#allocation2 + $0x31] sm:$0xff] %v3020_v33  ;;  %v3025_v38 = vadd.f32 %v2432_v37, %v2054_v31  ;;  %v420_v39 = vpop.f32.mrb[3].mxu0  ;;  %v2804_v37 = vld [vmem:[%s3334_s2 + $0xa8] sm:$0xff]  }
  0xfd   : > { %469 = vst [vmem:[#allocation2 + $0x11] sm:$0xff] %v3022_v36  ;;  %v3028_v40 = vadd.f32 %v2054_v31, %v420_v39  ;;  %v513_v41 = vpack.c.bf16 %v3022_v36, %v505_v35  ;;  %v2799_v35 = vld [vmem:[%s3334_s2 + $0x150] sm:$0xff]  }
  0xfe   : > { %472 = vst [vmem:[#allocation2 + $0x41] sm:$0xff] %v3025_v38  ;;  %v1069_v42 = vpack.c.bf16 %v3025_v38, %v3020_v33  ;;  %v2806_v39 = vld [vmem:[%s3334_s2 + $0xb0] sm:$0xff]  }
  0xff   : > { %470 = vst [vmem:[#allocation2 + $0x21] sm:$0xff] %v3028_v40  ;;  %2453 = vmatprep.mubr.bf16.mxu0 %v513_v41  ;;  %v3037_v43 = vpack.c.bf16 %v3020_v33, %v3028_v40  ;;  %v1068_v45 = vpack.c.bf16 %v3028_v40, %v3022_v36  ;;  %v2801_v36 = vld [vmem:[%s3334_s2 + $0x158] sm:$0xff]   ;;  %v2803_v40 = vld [vmem:[%s3334_s2 + $0x160] sm:$0xff]  }
 0x100   : > { %v2808_v41 = vld [vmem:[%s3334_s2 + $0xb8] sm:$0xff]  }
 0x101   : > { %v2435_v46 = vpop.f32.mrb[4].mxu0  ;;  %2454 = vmatmul.mubr.bf16.vlgmr.msra.gmra.mrb[8].mxu0 %v3037_v43 }
 0x102   : > { %v3045_v47 = vadd.f32 %v2435_v46, %v2054_v31  ;;  %v433_v48 = vpop.f32.mrb[5].mxu0  ;;  %2462 = vmatpush3.bf16.msra.mxu0 %v2778_v27 }
 0x103   : > { %v3047_v49 = vadd.f32 %v2054_v31, %v433_v48  ;;  %v2436_v50 = vpop.f32.mrb[6].mxu0  ;;  %2463 = vmatprep.subr.bf16.mxu0 %v2780_v44  ;;  %v912_v61 = vld [vmem:[#allocation2 + $0x30] sm:$0xff] }
 0x104   : > { %475 = vst [vmem:[#allocation2 + $0x71] sm:$0xff] %v3045_v47  ;;  %v3053_v52 = vadd.f32 %v2436_v50, %v2054_v31  ;;  %v436_v53 = vpop.f32.mrb[7].mxu0  ;;  %v910_v57 = vld [vmem:[#allocation2 + $0x10] sm:$0xff] }
 0x105   : > { %473 = vst [vmem:[#allocation2 + $0x51] sm:$0xff] %v3047_v49  ;;  %v3056_v54 = vadd.f32 %v2054_v31, %v436_v53  ;;  %v3058_v55 = vld [vmem:[#allocation2 + $0x40] sm:$0xff]  ;;  %v3062_v56 = vpack.c.bf16 %v3047_v49, %v3025_v38  ;;  %v485_v3 = vpack.c.bf16 %v910_v57, %v2858_v22  ;;  %v761_v29 = vld [vmem:[#allocation2 + $0x12] sm:$0xff] }
 0x106   : > { %476 = vst [vmem:[#allocation2 + $0x81] sm:$0xff] %v3053_v52  ;;  %v911_v58 = vld [vmem:[#allocation2 + $0x20] sm:$0xff]  ;;  %2464 = vmatpush3.bf16.msra.mxu0 %v2780_v44  ;;  %v1071_v59 = vpack.c.bf16 %v3053_v52, %v3045_v47  ;;  %v919_v63 = vpack.c.bf16 %v3058_v55, %v912_v61  ;;  %v2800_v31 = vld [vmem:[%s3334_s2 + $0x98] sm:$0xff]   ;;  %v768_v32 = vpack.c.bf16 %v761_v29, %v760_v28  ;;  %v2807_v44 = vld [vmem:[%s3334_s2 + $0x170] sm:$0xff]  }
 0x107   : > { %474 = vst [vmem:[#allocation2 + $0x61] sm:$0xff] %v3056_v54  ;;  %v918_v60 = vpack.c.bf16 %v911_v58, %v910_v57  ;;  %2457 = vmatprep.mubr.bf16.mxu0 %v3062_v56  ;;  %2465 = vmatprep.subr.bf16.mxu0 %v2782_v51  ;;  %v3071_v62 = vpack.c.bf16 %v3045_v47, %v3056_v54  ;;  %v1211_v33 = vld [vmem:[#allocation2 + $0x22] sm:$0xff]  ;;  %v763_v46 = vld [vmem:[#allocation2 + $0x32] sm:$0xff] }
 0x108   : > { %v1070_v2 = vpack.c.bf16 %v3056_v54, %v3047_v49  ;;  %v3117_v20 = vpack.c.bf16 %v912_v61, %v911_v58  ;;  %v1218_v38 = vpack.c.bf16 %v1211_v33, %v761_v29  ;;  %v3181_v47 = vpack.c.bf16 %v763_v46, %v1211_v33  ;;  %v764_v48 = vld [vmem:[#allocation2 + $0x42] sm:$0xff]  ;;  %v2809_v49 = vld [vmem:[%s3334_s2 + $0x178] sm:$0xff]   ;;  %v2840_v28 = vld [vmem:[%s3335_s3 + $0x30] sm:$0xff]  }
 0x109   : > { %2525 = vmatprep.mubr.bf16.mxu1 %v918_v60  ;;  %2458 = vmatmul.mubr.bf16.gmra.mrb[12].mxu0 %v3071_v62  ;;  %v1219_v57 = vpack.c.bf16 %v764_v48, %v763_v46  ;;  %v2811_v58 = vld [vmem:[%s3334_s2 + $0x188] sm:$0xff]   ;;  %v2812_v60 = vld [vmem:[%s3334_s2 + $0x190] sm:$0xff]   ;;  %v2841_v29 = vld [vmem:[%s3335_s3 + $0x38] sm:$0xff]  }
 0x10a   : > { %2526 = vmatmul.mubr.bf16.vlgmr.msra.gmra.mrb[0].mxu1 %v919_v63  ;;  %2466 = vmatpush3.bf16.msra.mxu0 %v2782_v51  ;;  %v2810_v51 = vld [vmem:[%s3334_s2 + $0x180] sm:$0xff]  }
 0x10b   : > { %2534 = vmatpush3.bf16.msra.mxu1 %v2779_v30  ;;  %2477 = vmatprep.mubr.bf16.mxu0 %v485_v3  ;;  %v916_v4 = vld [vmem:[#allocation2 + $0x70] sm:$0xff]  ;;  %v2797_v30 = vld [vmem:[%s3334_s2 + $0x148] sm:$0xff]  }
 0x10c   : > { %2535 = vmatprep.subr.bf16.mxu1 %v2781_v0  ;;  %2467 = vmatprep.subr.bf16.mxu0 %v2784_v1  ;;  %v914_v8 = vld [vmem:[#allocation2 + $0x50] sm:$0xff] }
 0x10d   : > { %v3090_v7 = vld [vmem:[#allocation2 + $0x80] sm:$0xff]  ;;  %v3126_v24 = vpack.c.bf16 %v914_v8, %v3058_v55  ;;  %v767_v54 = vld [vmem:[#allocation2 + $0x72] sm:$0xff] }
 0x10e   : > { %v915_v9 = vld [vmem:[#allocation2 + $0x60] sm:$0xff]  ;;  %v921_v10 = vpack.c.bf16 %v3090_v7, %v916_v4  ;;  %2468 = vmatpush3.bf16.msra.mxu0 %v2784_v1  ;;  %v2816_v3 = vld [vmem:[%s3334_s2 + $0x1b0] sm:$0xff]  }
 0x10f   : > { %2536 = vmatpush3.bf16.msra.mxu1 %v2781_v0  ;;  %v920_v11 = vpack.c.bf16 %v915_v9, %v914_v8  ;;  %2469 = vmatprep.subr.bf16.mxu0 %v2786_v5  ;;  %v3136_v27 = vpack.c.bf16 %v916_v4, %v915_v9  ;;  %v1215_v53 = vld [vmem:[#allocation2 + $0x62] sm:$0xff]  ;;  %v2813_v0 = vld [vmem:[%s3334_s2 + $0x198] sm:$0xff]   ;;  %v2820_v8 = vld [vmem:[%s3334_s2 + $0x1d0] sm:$0xff]   ;;  %v1372_v9 = vpack.c.bf16 %v2858_v22, %v3090_v7 }
 0x110   : > { %2537 = vmatprep.subr.bf16.mxu1 %v2783_v6  ;;  %v3193_v55 = vpack.c.bf16 %v767_v54, %v1215_v53  ;;  %v3202_v61 = vld [vmem:[#allocation2 + $0x82] sm:$0xff]  ;;  %v2817_v4 = vld [vmem:[%s3334_s2 + $0x1b8] sm:$0xff]   ;;  %v2824_v7 = vld [vmem:[%s3334_s2 + $0x1f0] sm:$0xff]  }
 0x111   : > { %2529 = vmatprep.mubr.bf16.mxu1 %v920_v11  ;;  %v1221_v63 = vpack.c.bf16 %v3202_v61, %v767_v54  ;;  %v2814_v1 = vld [vmem:[%s3334_s2 + $0x1a0] sm:$0xff]   ;;  %v2823_v22 = vld [vmem:[%s3334_s2 + $0x1e8] sm:$0xff]  }
 0x112   : > { %2530 = vmatmul.mubr.bf16.gmra.mrb[4].mxu1 %v921_v10  ;;  %2470 = vmatpush3.bf16.msra.mxu0 %v2786_v5  ;;  %v2818_v5 = vld [vmem:[%s3334_s2 + $0x1c0] sm:$0xff]   ;;  %v2821_v10 = vld [vmem:[%s3334_s2 + $0x1d8] sm:$0xff]  }
 0x113   : > { %2538 = vmatpush3.bf16.msra.mxu1 %v2783_v6  ;;  %2549 = vmatprep.mubr.bf16.mxu1 %v1068_v45  ;;  %v765_v45 = vld [vmem:[#allocation2 + $0x52] sm:$0xff]  ;;  %v2819_v6 = vld [vmem:[%s3334_s2 + $0x1c8] sm:$0xff]   ;;  %v2822_v11 = vld [vmem:[%s3334_s2 + $0x1e0] sm:$0xff]  }
 0x114   : > { %2539 = vmatprep.subr.bf16.mxu1 %v2785_v12  ;;  %2471 = vmatprep.subr.bf16.mxu0 %v2788_v13  ;;  %v3186_v50 = vpack.c.bf16 %v765_v45, %v764_v48 }
 0x116   : > { %2472 = vmatpush3.bf16.msra.mxu0 %v2788_v13  ;;  %v2827_v13 = vld [vmem:[%s3334_s2 + $0x208] sm:$0xff]  }
 0x117   : > { %2540 = vmatpush3.bf16.msra.mxu1 %v2785_v12  ;;  %2473 = vmatprep.subr.bf16.mxu0 %v2790_v14  ;;  %v2826_v12 = vld [vmem:[%s3334_s2 + $0x200] sm:$0xff]  }
 0x118   : > { %2541 = vmatprep.subr.bf16.mxu1 %v2787_v15 }
 0x11a   : > { %2474 = vmatpush3.bf16.msra.mxu0 %v2790_v14  ;;  %v2828_v14 = vld [vmem:[%s3334_s2 + $0x210] sm:$0xff]  }
 0x11b   : > { %2542 = vmatpush3.bf16.msra.mxu1 %v2787_v15  ;;  %2475 = vmatprep.subr.bf16.mxu0 %v2792_v16  ;;  %v1518_v15 = vld [vmem:[#allocation2 + $0x91] sm:$0xff] }
 0x11c   : > { %2543 = vmatprep.subr.bf16.mxu1 %v2789_v17 }
 0x11e   : > { %2476 = vmatpush3.bf16.msra.mxu0 %v2792_v16  ;;  %v1522_v16 = vpack.c.bf16 %v1518_v15, %v3053_v52  ;;  %v2831_v52 = vld [vmem:[%s3334_s2 + $0x228] sm:$0xff]  }
 0x11f   : > { %2544 = vmatpush3.bf16.msra.mxu1 %v2789_v17  ;;  %2485 = vmatprep.subr.bf16.mxu0 %v2794_v18  ;;  %v2829_v17 = vld [vmem:[%s3334_s2 + $0x218] sm:$0xff]  }
 0x120   : > { %2545 = vmatprep.subr.bf16.mxu1 %v2791_v19 }
 0x121   : > { %2478 = vmatmul.mubr.bf16.vlgmr.msra.gmra.mrb[8].mxu0 %v3117_v20 }
 0x122   : > { %2481 = vmatprep.mubr.bf16.mxu0 %v3126_v24  ;;  %2486 = vmatpush3.bf16.msra.mxu0 %v2794_v18  ;;  %v2834_v18 = vld [vmem:[%s3335_s3] sm:$0xff]  }
 0x123   : > { %2546 = vmatpush3.bf16.msra.mxu1 %v2791_v19  ;;  %2487 = vmatprep.subr.bf16.mxu0 %v2796_v21  ;;  %v2835_v19 = vld [vmem:[%s3335_s3 + $0x8] sm:$0xff]  }
 0x124   : > { %2547 = vmatprep.subr.bf16.mxu1 %v2793_v23 }
 0x126   : > { %2488 = vmatpush3.bf16.msra.mxu0 %v2796_v21  ;;  %v2836_v21 = vld [vmem:[%s3335_s3 + $0x10] sm:$0xff]  }
 0x127   : > { %2548 = vmatpush3.bf16.msra.mxu1 %v2793_v23  ;;  %2489 = vmatprep.subr.bf16.mxu0 %v2798_v25  ;;  %v2837_v23 = vld [vmem:[%s3335_s3 + $0x18] sm:$0xff]  }
 0x128   : > { %2557 = vmatprep.subr.bf16.mxu1 %v2795_v26 }
 0x129   : > { %2482 = vmatmul.mubr.bf16.gmra.mrb[12].mxu0 %v3136_v27 }
 0x12a   : > { %2550 = vmatmul.mubr.bf16.vlgmr.msra.gmra.mrb[0].mxu1 %v1069_v42  ;;  %2490 = vmatpush3.bf16.msra.mxu0 %v2798_v25  ;;  %v2805_v42 = vld [vmem:[%s3334_s2 + $0x168] sm:$0xff]   ;;  %v1668_v25 = vld [vmem:[#allocation2 + $0x92] sm:$0xff] }
 0x12b   : > { %2553 = vmatprep.mubr.bf16.mxu1 %v1070_v2  ;;  %2558 = vmatpush3.bf16.msra.mxu1 %v2795_v26  ;;  %v2815_v2 = vld [vmem:[%s3334_s2 + $0x1a8] sm:$0xff]  }
 0x12c   : > { %2559 = vmatprep.subr.bf16.mxu1 %v2797_v30  ;;  %2501 = vmatprep.mubr.bf16.mxu0 %v768_v32  ;;  %v2839_v26 = vld [vmem:[%s3335_s3 + $0x28] sm:$0xff]  }
 0x12d   : > { %2491 = vmatprep.subr.bf16.mxu0 %v2800_v31 }
 0x12e   : > { %2492 = vmatpush3.bf16.msra.mxu0 %v2800_v31 }
 0x12f   : > { %2560 = vmatpush3.bf16.msra.mxu1 %v2797_v30  ;;  %2493 = vmatprep.subr.bf16.mxu0 %v2802_v34 }
 0x130   : > { %2561 = vmatprep.subr.bf16.mxu1 %v2799_v35 }
 0x132   : > { %2554 = vmatmul.mubr.bf16.gmra.mrb[4].mxu1 %v1071_v59  ;;  %2494 = vmatpush3.bf16.msra.mxu0 %v2802_v34  ;;  %v1220_v59 = vpack.c.bf16 %v1215_v53, %v765_v45 }
 0x133   : > { %2562 = vmatpush3.bf16.msra.mxu1 %v2799_v35  ;;  %2573 = vmatprep.mubr.bf16.mxu1 %v1218_v38 }
 0x134   : > { %2563 = vmatprep.subr.bf16.mxu1 %v2801_v36  ;;  %2495 = vmatprep.subr.bf16.mxu0 %v2804_v37 }
 0x136   : > { %2496 = vmatpush3.bf16.msra.mxu0 %v2804_v37 }
 0x137   : > { %2564 = vmatpush3.bf16.msra.mxu1 %v2801_v36  ;;  %2497 = vmatprep.subr.bf16.mxu0 %v2806_v39 }
 0x138   : > { %2565 = vmatprep.subr.bf16.mxu1 %v2803_v40 }
 0x13a   : > { %2498 = vmatpush3.bf16.msra.mxu0 %v2806_v39 }
 0x13b   : > { %2566 = vmatpush3.bf16.msra.mxu1 %v2803_v40  ;;  %2499 = vmatprep.subr.bf16.mxu0 %v2808_v41 }
 0x13c   : > { %2567 = vmatprep.subr.bf16.mxu1 %v2805_v42 }
 0x13e   : > { %2500 = vmatpush3.bf16.msra.mxu0 %v2808_v41  ;;  %v2267_v41 = vld [vmem:[%s3337_s5] ss:$0 sm:$0xff] }
 0x13f   : > { %2568 = vmatpush3.bf16.msra.mxu1 %v2805_v42  ;;  %2653 = vmatprep.subr.bf16.mxu0 %v2834_v18 }
 0x140   : > { %2569 = vmatprep.subr.bf16.mxu1 %v2807_v44 }
 0x141   : > { %2502 = vmatmul.mubr.bf16.vlgmr.msra.gmra.mrb[8].mxu0 %v3181_v47 }
 0x142   : > { %2505 = vmatprep.mubr.bf16.mxu0 %v3186_v50  ;;  %2654 = vmatpush3.bf16.msra.mxu0 %v2834_v18 }
 0x143   : > { %2570 = vmatpush3.bf16.msra.mxu1 %v2807_v44  ;;  %2655 = vmatprep.subr.bf16.mxu0 %v2835_v19 }
 0x144   : > { %2571 = vmatprep.subr.bf16.mxu1 %v2809_v49 }
 0x146   : > { %2656 = vmatpush3.bf16.msra.mxu0 %v2835_v19 }
 0x147   : > { %2572 = vmatpush3.bf16.msra.mxu1 %v2809_v49  ;;  %2657 = vmatprep.subr.bf16.mxu0 %v2836_v21 }
 0x148   : > { %2581 = vmatprep.subr.bf16.mxu1 %v2810_v51 }
 0x149   : > { %2506 = vmatmul.mubr.bf16.gmra.mrb[12].mxu0 %v3193_v55 }
 0x14a   : > { %2574 = vmatmul.mubr.bf16.vlgmr.msra.gmra.mrb[0].mxu1 %v1219_v57  ;;  %2658 = vmatpush3.bf16.msra.mxu0 %v2836_v21  ;;  %v2848_v21 = vld [vmem:[%s2922_s12 + $0x18] sm:$0xff]  }
 0x14b   : > { %2577 = vmatprep.mubr.bf16.mxu1 %v1220_v59  ;;  %2582 = vmatpush3.bf16.msra.mxu1 %v2810_v51 }
 0x14c   : > { %2583 = vmatprep.subr.bf16.mxu1 %v2811_v58  ;;  %2659 = vmatprep.subr.bf16.mxu0 %v2837_v23 }
 0x14e   : > { %2660 = vmatpush3.bf16.msra.mxu0 %v2837_v23  ;;  %v1972_v23 = vunpack.c.l.bf16 %v2848_v21 }
 0x14f   : > { %2584 = vmatpush3.bf16.msra.mxu1 %v2811_v58 }
 0x150   : > { %2585 = vmatprep.subr.bf16.mxu1 %v2812_v60 }
 0x152   : > { %2578 = vmatmul.mubr.bf16.gmra.mrb[4].mxu1 %v1221_v63 }
 0x153   : > { %2586 = vmatpush3.bf16.msra.mxu1 %v2812_v60  ;;  %2597 = vmatprep.mubr.bf16.mxu1 %v3117_v20  ;;  %v2833_v20 = vld [vmem:[%s3334_s2 + $0x238] sm:$0xff]  }
 0x154   : > { %2587 = vmatprep.subr.bf16.mxu1 %v2813_v0 }
 0x157   : > { %2588 = vmatpush3.bf16.msra.mxu1 %v2813_v0 }
 0x158   : > { %2589 = vmatprep.subr.bf16.mxu1 %v2814_v1 }
 0x15b   : > { %2590 = vmatpush3.bf16.msra.mxu1 %v2814_v1 }
 0x15c   : > { %2591 = vmatprep.subr.bf16.mxu1 %v2815_v2 }
 0x15f   : > { %2592 = vmatpush3.bf16.msra.mxu1 %v2815_v2 }
 0x160   : > { %2593 = vmatprep.subr.bf16.mxu1 %v2816_v3 }
 0x163   : > { %2594 = vmatpush3.bf16.msra.mxu1 %v2816_v3 }
 0x164   : > { %2595 = vmatprep.subr.bf16.mxu1 %v2817_v4 }
 0x167   : > { %2596 = vmatpush3.bf16.msra.mxu1 %v2817_v4 }
 0x168   : > { %2605 = vmatprep.subr.bf16.mxu1 %v2818_v5 }
 0x16a   : > { %2598 = vmatmul.mubr.bf16.vlgmr.msra.gmra.mrb[0].mxu1 %v3126_v24  ;;  %v2838_v24 = vld [vmem:[%s3335_s3 + $0x20] sm:$0xff]  }
 0x16b   : > { %2601 = vmatprep.mubr.bf16.mxu1 %v3136_v27  ;;  %2606 = vmatpush3.bf16.msra.mxu1 %v2818_v5  ;;  %v1672_v27 = vpack.c.bf16 %v1668_v25, %v3202_v61  ;;  %v2849_v25 = vld [vmem:[%s2922_s12 + $0x10] sm:$0xff]  }
 0x16c   : > { %2607 = vmatprep.subr.bf16.mxu1 %v2819_v6  ;;  %2661 = vmatprep.subr.bf16.mxu0 %v2838_v24 }
 0x16d   : > { %2662 = vmatpush3.bf16.msra.mxu0 %v2838_v24 }
 0x16e   : > { %2663 = vmatprep.subr.bf16.mxu0 %v2839_v26 }
 0x16f   : > { %2608 = vmatpush3.bf16.msra.mxu1 %v2819_v6 }
 0x170   : > { %2609 = vmatprep.subr.bf16.mxu1 %v2820_v8 }
 0x171   : > { %2664 = vmatpush3.bf16.msra.mxu0 %v2839_v26  ;;  %v1970_v26 = vunpack.c.l.bf16 %v2849_v25 }
 0x172   : > { %2602 = vmatmul.mubr.bf16.gmra.mrb[4].mxu1 %v1372_v9  ;;  %2665 = vmatprep.subr.bf16.mxu0 %v2840_v28  ;;  %v2846_v9 = vld [vmem:[%s2922_s12 + $0x8] sm:$0xff]  }
 0x173   : > { %2610 = vmatpush3.bf16.msra.mxu1 %v2820_v8  ;;  %2621 = vmatprep.mubr.bf16.mxu1 %v3037_v43  ;;  %v2825_v43 = vld [vmem:[%s3334_s2 + $0x1f8] sm:$0xff]   ;;  %v2268_v8 = vld [vmem:[%s3338_s6] ss:$0 sm:$0xff] }
 0x174   : > { %2611 = vmatprep.subr.bf16.mxu1 %v2821_v10 }
 0x175   : > { %2666 = vmatpush3.bf16.msra.mxu0 %v2840_v28 }
 0x176   : > { %2667 = vmatprep.subr.bf16.mxu0 %v2841_v29 }
 0x177   : > { %2612 = vmatpush3.bf16.msra.mxu1 %v2821_v10  ;;  %v1968_v10 = vunpack.c.l.bf16 %v2846_v9 }
 0x178   : > { %2613 = vmatprep.subr.bf16.mxu1 %v2822_v11 }
 0x179   : > { %2668 = vmatpush3.bf16.msra.mxu0 %v2841_v29  ;;  %v1973_v29 = vunpack.c.h.bf16 %v2848_v21 }
 0x17b   : > { %2614 = vmatpush3.bf16.msra.mxu1 %v2822_v11  ;;  %v2847_v11 = vld [vmem:[%s2922_s12] sm:$0xff]  }
 0x17c   : > { %2615 = vmatprep.subr.bf16.mxu1 %v2823_v22 }
 0x17f   : > { %2616 = vmatpush3.bf16.msra.mxu1 %v2823_v22  ;;  %v1966_v22 = vunpack.c.l.bf16 %v2847_v11 }
 0x180   : > { %2617 = vmatprep.subr.bf16.mxu1 %v2824_v7 }
 0x183   : > { %2618 = vmatpush3.bf16.msra.mxu1 %v2824_v7 }
 0x184   : > { %2619 = vmatprep.subr.bf16.mxu1 %v2825_v43 }
 0x187   : > { %2620 = vmatpush3.bf16.msra.mxu1 %v2825_v43 }
 0x188   : > { %2629 = vmatprep.subr.bf16.mxu1 %v2826_v12 }
 0x18a   : > { %2622 = vmatmul.mubr.bf16.vlgmr.msra.gmra.mrb[0].mxu1 %v3062_v56  ;;  %v2830_v56 = vld [vmem:[%s3334_s2 + $0x220] sm:$0xff]  }
 0x18b   : > { %2625 = vmatprep.mubr.bf16.mxu1 %v3071_v62  ;;  %2630 = vmatpush3.bf16.msra.mxu1 %v2826_v12  ;;  %v2832_v62 = vld [vmem:[%s3334_s2 + $0x230] sm:$0xff]  }
 0x18c   : > { %2631 = vmatprep.subr.bf16.mxu1 %v2827_v13 }
 0x18f   : > { %2632 = vmatpush3.bf16.msra.mxu1 %v2827_v13  ;;  %v1969_v13 = vunpack.c.h.bf16 %v2846_v9 }
 0x190   : > { %2633 = vmatprep.subr.bf16.mxu1 %v2828_v14 }
 0x192   : > { %2626 = vmatmul.mubr.bf16.gmra.mrb[4].mxu1 %v1522_v16 }
 0x193   : > { %2634 = vmatpush3.bf16.msra.mxu1 %v2828_v14  ;;  %2645 = vmatprep.mubr.bf16.mxu1 %v3181_v47  ;;  %v1967_v14 = vunpack.c.h.bf16 %v2847_v11 }
 0x194   : > { %2635 = vmatprep.subr.bf16.mxu1 %v2829_v17 }
 0x197   : > { %2636 = vmatpush3.bf16.msra.mxu1 %v2829_v17 }
 0x198   : > { %2637 = vmatprep.subr.bf16.mxu1 %v2830_v56 }
 0x19b   : > { %2638 = vmatpush3.bf16.msra.mxu1 %v2830_v56 }
 0x19c   : > { %2639 = vmatprep.subr.bf16.mxu1 %v2831_v52 }
 0x19f   : > { %2640 = vmatpush3.bf16.msra.mxu1 %v2831_v52 }
 0x1a0   : > { %2641 = vmatprep.subr.bf16.mxu1 %v2832_v62 }
 0x1a3   : > { %2642 = vmatpush3.bf16.msra.mxu1 %v2832_v62 }
 0x1a4   : > { %2643 = vmatprep.subr.bf16.mxu1 %v2833_v20 }
 0x1a7   : > { %2644 = vmatpush3.bf16.msra.mxu1 %v2833_v20 }
 0x1aa   : > { %2646 = vmatmul.mubr.bf16.vlgmr.msra.gmra.mrb[0].mxu1 %v3186_v50 }
 0x1ab   : > { %2649 = vmatprep.mubr.bf16.mxu1 %v3193_v55 }
 0x1b2   : > { %2650 = vmatmul.mubr.bf16.gmra.mrb[4].mxu1 %v1672_v27 }
 0x214   : > { %v2503_v30 = vpop.f32.mrb[8].mxu0 }
 0x215   : > { %v871_v31 = vpop.f32.mrb[9].mxu0 }
 0x216   : > { %v2504_v32 = vpop.f32.mrb[10].mxu0 }
 0x217   : > { %v874_v34 = vpop.f32.mrb[11].mxu0 }
 0x21c   : > { %v2507_v35 = vpop.f32.mrb[12].mxu0 }
 0x21d   : > { %v887_v33 = vpop.f32.mrb[13].mxu0 }
 0x21e   : > { %v2508_v36 = vpop.f32.mrb[14].mxu0 }
 0x21f   : > { %v890_v37 = vpop.f32.mrb[15].mxu0 }
 0x27d   : > { %v2647_v38 = vpop.f32.mrb[0].mxu1 }
 0x27e   : > { %v2677_v39 = vadd.f32 %v2647_v38, %v2503_v30  ;;  %v1772_v40 = vpop.f32.mrb[1].mxu1 }
 0x27f   : > { %v2678_v42 = vadd.f32 %v1772_v40, %v871_v31  ;;  %v2648_v44 = vpop.f32.mrb[2].mxu1 }
 0x280   : > { %v2679_v45 = vadd.f32 %v2648_v44, %v2504_v32  ;;  %v1775_v46 = vpop.f32.mrb[3].mxu1  ;;  %v1820_v48 = vadd.f32 %v2677_v39, %v2267_v41  ;;  %v1971_v32 = vunpack.c.h.bf16 %v2849_v25 }
 0x281   : > { %v2680_v47 = vadd.f32 %v1775_v46, %v874_v34  ;;  %v1818_v50 = vadd.f32 %v2678_v42, %v2267_v41 }
 0x282   : > { %v1821_v49 = vadd.f32 %v2679_v45, %v2267_v41 }
 0x283   : > { %v1819_v51 = vadd.f32 %v2680_v47, %v2267_v41 }
 0x284   : > { %v1827_v53 = vpack.c.bf16 %v1821_v49, %v1820_v48 }
 0x285   : > { %v2651_v54 = vpop.f32.mrb[4].mxu1  ;;  %v1826_v55 = vpack.c.bf16 %v1819_v51, %v1818_v50 }
 0x286   : > { %v2681_v57 = vadd.f32 %v2651_v54, %v2507_v35  ;;  %v1788_v58 = vpop.f32.mrb[5].mxu1 }
 0x287   : > { %v2682_v59 = vadd.f32 %v1788_v58, %v887_v33  ;;  %v2652_v60 = vpop.f32.mrb[6].mxu1  ;;  %2669 = vmatprep.mubr.bf16.mxu0 %v1826_v55 }
 0x288   : > { %v2683_v61 = vadd.f32 %v2652_v60, %v2508_v36  ;;  %v1791_v63 = vpop.f32.mrb[7].mxu1  ;;  %2670 = vmatmul.mubr.bf16.vlgmr.msra.gmra.mrb[16].mxu0 %v1827_v53  ;;  %v1824_v1 = vadd.f32 %v2681_v57, %v2267_v41 }
 0x289   : > { %v2684_v0 = vadd.f32 %v1791_v63, %v890_v37  ;;  %v1822_v3 = vadd.f32 %v2682_v59, %v2267_v41 }
 0x28a   : > { %v1825_v2 = vadd.f32 %v2683_v61, %v2267_v41 }
 0x28b   : > { %v1823_v4 = vadd.f32 %v2684_v0, %v2267_v41 }
 0x28c   : > { %v1829_v5 = vpack.c.bf16 %v1825_v2, %v1824_v1 }
 0x28d   : > { %v1828_v6 = vpack.c.bf16 %v1823_v4, %v1822_v3 }
 0x28f   : > { %2673 = vmatprep.mubr.bf16.mxu0 %v1828_v6 }
 0x290   : > { %2674 = vmatmul.mubr.bf16.gmra.mrb[20].mxu0 %v1829_v5 }
 0x35b   : > { %v2671_v7 = vpop.f32.mrb[16].mxu0 }
 0x35c   : > { %v1944_v43 = vadd.f32 %v2671_v7, %v2268_v8  ;;  %v1935_v12 = vpop.f32.mrb[17].mxu0 }
 0x35d   : > { %v1936_v15 = vadd.f32 %v2268_v8, %v1935_v12  ;;  %v2672_v16 = vpop.f32.mrb[18].mxu0 }
 0x35e   : > { %v1976_v17 = vadd.f32 %v1968_v10, %v1944_v43  ;;  %v1947_v56 = vadd.f32 %v2672_v16, %v2268_v8  ;;  %v1938_v52 = vpop.f32.mrb[19].mxu0 }
 0x35f   : > { %v1974_v62 = vadd.f32 %v1966_v22, %v1936_v15  ;;  %v1939_v18 = vadd.f32 %v2268_v8, %v1938_v52 }
 0x360   : > { %1984 = vst [vmem:[%s3317_s11 + $0x10] sm:$0xff] %v1976_v17  ;;  %v1977_v19 = vadd.f32 %v1969_v13, %v1947_v56 }
 0x361   : > { %1982 = vst [vmem:[%s3317_s11] sm:$0xff] %v1974_v62  ;;  %v1975_v20 = vadd.f32 %v1967_v14, %v1939_v18 }
 0x362   : > { %1985 = vst [vmem:[%s3317_s11 + $0x18] sm:$0xff] %v1977_v19 }
 0x363   : > { %1983 = vst [vmem:[%s3317_s11 + $0x8] sm:$0xff] %v1975_v20  ;;  %v2675_v24 = vpop.f32.mrb[20].mxu0 }
 0x364   : > { %v1960_v27 = vadd.f32 %v2675_v24, %v2268_v8  ;;  %v1951_v28 = vpop.f32.mrb[21].mxu0 }
 0x365   : > { %v1952_v30 = vadd.f32 %v2268_v8, %v1951_v28  ;;  %v2676_v31 = vpop.f32.mrb[22].mxu0 }
 0x366   : > { %v1980_v34 = vadd.f32 %v1972_v23, %v1960_v27  ;;  %v1963_v35 = vadd.f32 %v2676_v31, %v2268_v8  ;;  %v1954_v33 = vpop.f32.mrb[23].mxu0 }
 0x367   : > { %v1978_v36 = vadd.f32 %v1970_v26, %v1952_v30  ;;  %v1955_v37 = vadd.f32 %v2268_v8, %v1954_v33 }
 0x368   : > { %1988 = vst [vmem:[%s3317_s11 + $0x30] sm:$0xff] %v1980_v34  ;;  %v1981_v38 = vadd.f32 %v1973_v29, %v1963_v35 }
 0x369   : > { %1986 = vst [vmem:[%s3317_s11 + $0x20] sm:$0xff] %v1978_v36  ;;  %v1979_v39 = vadd.f32 %v1971_v32, %v1955_v37 }
 0x36a   : > { %1989 = vst [vmem:[%s3317_s11 + $0x38] sm:$0xff] %v1981_v38 }
 0x36b   : > { %1987 = vst [vmem:[%s3317_s11 + $0x28] sm:$0xff] %v1979_v39 }
 0x36c PF: > { %s17_s24 = sadd.s32 1, %s2856_s24  }
 0x36d   : > { %p14_p4 = scmp.ge.s32.totalorder %s17_s24, 4  }
 0x36f   :  { %16 = sbr.rel (!%p14_p4) target bundleno = 1 (0x1), region = 88 }

</bundles_post_ra>
